<compile_context>
chip_gen: v7x
topology: tpu7x:2x2x1
jax: 0.10.0
libtpu: 0.0.40
codegen_flags: <defaults>
</compile_context>

<pallas_src>
import functools

import jax
import jax.numpy as jnp
from jax.experimental import pallas as pl
from jax.experimental.pallas import tpu as pltpu

SUBLANES = 8  # TPU sublane granularity (second-to-last dim)


def _round_up(n, m):
    return ((n + m - 1) // m) * m


def _cdiv(a, b):
    return -(-a // b)


# Constant-index (weights-resident) blocks need no double-buffering.
try:
    _RESIDENT = dict(pipeline_mode=pl.Buffered(1))
except Exception:  # pragma: no cover - fallback if Buffered is unavailable
    _RESIDENT = {}


# ---------------------------------------------------------------------------
# Kernel: one (TILE_B, A) output block of relu(x @ W1 + b1) @ W2 + b2
# ---------------------------------------------------------------------------
def dqn_kernel(x_ref, w1_ref, b1_ref, w2_ref, b2_ref, o_ref):
    # Layer 1 on the MXU with f32 accumulation; bias + ReLU stay f32 (VPU).
    h = jnp.dot(x_ref[...], w1_ref[...], preferred_element_type=jnp.float32)
    h = jnp.maximum(h + b1_ref[...], 0.0)            # (TB, H) + (1, H)
    # Layer 2: cast the activation to the weight dtype only at the MXU input.
    out = jnp.dot(h.astype(w2_ref.dtype), w2_ref[...],
                  preferred_element_type=jnp.float32)
    o_ref[...] = (out + b2_ref[...]).astype(o_ref.dtype)   # narrow f32 store


# ---------------------------------------------------------------------------
# Parameters
# ---------------------------------------------------------------------------
def init_params(key, input_dim, n_actions, hidden=64):
    # PyTorch-style uniform fan-in init (deterministic given the key).
    k1, k2, k3, k4 = jax.random.split(key, 4)
    bound1 = 1.0 / jnp.sqrt(input_dim)
    bound2 = 1.0 / jnp.sqrt(hidden)
    w1 = jax.random.uniform(k1, (input_dim, hidden), jnp.float32, -bound1, bound1)
    b1 = jax.random.uniform(k2, (hidden,), jnp.float32, -bound1, bound1)
    w2 = jax.random.uniform(k3, (hidden, n_actions), jnp.float32, -bound2, bound2)
    b2 = jax.random.uniform(k4, (n_actions,), jnp.float32, -bound2, bound2)
    return w1, b1, w2, b2


def prepare_params(w1, b1, w2, b2, compute_dtype=jnp.bfloat16):
    """One-time packing: weights to the matmul dtype, biases as 2-D f32 rows.
    No lane padding of W2/b2 -- the kernel stores exactly n_actions columns."""
    _, h = w1.shape
    a = w2.shape[1]
    return (w1.astype(compute_dtype),
            b1.reshape(1, h).astype(jnp.float32),
            w2.astype(compute_dtype),
            b2.reshape(1, a).astype(jnp.float32))


# ---------------------------------------------------------------------------
# Tiling selection (static: shapes are concrete under jit)
# ---------------------------------------------------------------------------
def _pick_tile(b, single_shot_max, n_tiles_target, min_tile, max_tile):
    if b <= single_shot_max:
        return None                        # single-shot, no-grid path
    tile = min(max(_cdiv(b, n_tiles_target), min_tile), max_tile)
    n_tiles = _cdiv(b, tile)
    # Rebalance so B is padded only up to the next multiple of the tile
    # (waste <= 7 rows per tile instead of up to a whole tile).
    tile = _round_up(_cdiv(b, n_tiles), SUBLANES)
    return tile


# ---------------------------------------------------------------------------
# Forward wrapper (jitted: cast / pad / slice fuse around the pallas_call)
# ---------------------------------------------------------------------------
@functools.partial(jax.jit, static_argnames=(
    "single_shot_max", "n_tiles_target", "min_tile", "max_tile"))
def dqn_forward(x, params, *, single_shot_max=512, n_tiles_target=4,
                min_tile=256, max_tile=4096):
    w1, b1, w2, b2 = params
    b, d = x.shape
    h = w1.shape[1]
    a = w2.shape[1]
    x = x.astype(w1.dtype)                 # fused under jit

    tile_b = _pick_tile(b, single_shot_max, n_tiles_target, min_tile, max_tile)

    if tile_b is None:
        # --- Single-shot path: no grid, whole operands resident in VMEM. ---
        b_pad = _round_up(max(b, SUBLANES), SUBLANES)
        if b_pad != b:
            x = jnp.pad(x, ((0, b_pad - b), (0, 0)))
        out = pl.pallas_call(
            dqn_kernel,
            out_shape=jax.ShapeDtypeStruct((b_pad, a), jnp.float32),
            in_specs=[pl.BlockSpec(memory_space=pltpu.MemorySpace.VMEM)] * 5,
            out_specs=pl.BlockSpec(memory_space=pltpu.MemorySpace.VMEM),
        )(x, w1, b1, w2, b2)
    else:
        # --- Grid path: tiles over the batch, weights VMEM-resident. -------
        b_pad = _round_up(b, tile_b)
        if b_pad != b:
            x = jnp.pad(x, ((0, b_pad - b), (0, 0)))
        out = pl.pallas_call(
            dqn_kernel,
            out_shape=jax.ShapeDtypeStruct((b_pad, a), jnp.float32),
            grid=(b_pad // tile_b,),
            in_specs=[
                pl.BlockSpec((tile_b, d), lambda i: (i, 0)),            # x tile
                pl.BlockSpec((d, h), lambda i: (0, 0), **_RESIDENT),    # W1
                pl.BlockSpec((1, h), lambda i: (0, 0), **_RESIDENT),    # b1
                pl.BlockSpec((h, a), lambda i: (0, 0), **_RESIDENT),    # W2
                pl.BlockSpec((1, a), lambda i: (0, 0), **_RESIDENT),    # b2
            ],
            out_specs=pl.BlockSpec((tile_b, a), lambda i: (i, 0)),
            compiler_params=pltpu.CompilerParams(
                dimension_semantics=("parallel",)),   # megacore sharding (v7x)
        )(x, w1, b1, w2, b2)

    return out[:b]                         # fused slice under jit


# ---------------------------------------------------------------------------
# Reference (matches the kernel's dtype behavior: bf16 matmul inputs, f32 acc)
# ---------------------------------------------------------------------------
def dqn_reference(x, w1, b1, w2, b2, compute_dtype=jnp.bfloat16):
    f32 = jnp.float32
    xc = x.astype(compute_dtype).astype(f32)
    w1c = w1.astype(compute_dtype).astype(f32)
    w2c = w2.astype(compute_dtype).astype(f32)
    hid = jnp.maximum(xc @ w1c + b1.astype(f32), 0.0)
    hid = hid.astype(compute_dtype).astype(f32)
    return hid @ w2c + b2.astype(f32)


if __name__ == "__main__":
    key = jax.random.PRNGKey(0)
    k_x, k_xb, k_p = jax.random.split(key, 3)

    input_dim = 16
    n_actions = 4

    w1, b1, w2, b2 = init_params(k_p, input_dim, n_actions)
    params = prepare_params(w1, b1, w2, b2)   # one-time cast / reshape

    # --- small batch (acting loop): single-shot, no-grid kernel -------------
    x_small = jax.random.normal(k_x, (8, input_dim), dtype=jnp.float32)
    out_small = jax.block_until_ready(dqn_forward(x_small, params))
    ref_small = dqn_reference(x_small, w1, b1, w2, b2)
    assert out_small.shape == (8, n_actions)
    assert jnp.allclose(out_small, ref_small, atol=1e-2, rtol=1e-2)

    # --- large batch (replay-buffer sweep): 4 parallel grid tiles of 256 ----
    x_big = jax.random.normal(k_xb, (1000, input_dim), dtype=jnp.float32)
    out_big = jax.block_until_ready(dqn_forward(x_big, params))
    ref_big = dqn_reference(x_big, w1, b1, w2, b2)
    assert out_big.shape == (1000, n_actions)
    assert jnp.allclose(out_big, ref_big, atol=1e-2, rtol=1e-2)

    print("KERNEL_OK")
</pallas_src>

<mosaic_0001>
module attributes {stable_mosaic.version = 11 : i64} {
  func.func @dqn_kernel(%arg0: memref<8x16xbf16, #tpu.memory_space<vmem>>, %arg1: memref<16x64xbf16, #tpu.memory_space<vmem>>, %arg2: memref<1x64xf32, #tpu.memory_space<vmem>>, %arg3: memref<64x4xbf16, #tpu.memory_space<vmem>>, %arg4: memref<1x4xf32, #tpu.memory_space<vmem>>, %arg5: memref<8x4xf32, #tpu.memory_space<vmem>>) attributes {dimension_semantics = [], scalar_prefetch = 0 : i64, scratch_operands = 0 : i64, tpu.core_type = #tpu.core_type<tc>} {
    %c0 = arith.constant 0 : index
    %c0_0 = arith.constant 0 : index
    %0 = vector.load %arg0[%c0, %c0_0] : memref<8x16xbf16, #tpu.memory_space<vmem>>, vector<8x16xbf16>
    %c0_1 = arith.constant 0 : index
    %c0_2 = arith.constant 0 : index
    %1 = vector.load %arg1[%c0_1, %c0_2] : memref<16x64xbf16, #tpu.memory_space<vmem>>, vector<16x64xbf16>
    %cst = arith.constant dense<0.000000e+00> : vector<8x64xf32>
    %2 = tpu.matmul %0, %1, %cst {dimension_numbers = #tpu.dot_dimension_numbers<[1], [0], [0], [1], [0, 0, 1, 1], [], []>} : vector<8x16xbf16>, vector<16x64xbf16>, vector<8x64xf32> -> vector<8x64xf32>
    %c0_3 = arith.constant 0 : index
    %c0_4 = arith.constant 0 : index
    %3 = vector.load %arg2[%c0_3, %c0_4] : memref<1x64xf32, #tpu.memory_space<vmem>>, vector<1x64xf32>
    %4 = vector.broadcast %3 : vector<1x64xf32> to vector<8x64xf32>
    %5 = arith.addf %2, %4 : vector<8x64xf32>
    %cst_5 = arith.constant 0.000000e+00 : f32
    %6 = vector.broadcast %cst_5 : f32 to vector<8x64xf32>
    %7 = arith.maximumf %5, %6 : vector<8x64xf32>
    %8 = arith.truncf %7 : vector<8x64xf32> to vector<8x64xbf16>
    %c0_6 = arith.constant 0 : index
    %c0_7 = arith.constant 0 : index
    %9 = vector.load %arg3[%c0_6, %c0_7] : memref<64x4xbf16, #tpu.memory_space<vmem>>, vector<64x4xbf16>
    %cst_8 = arith.constant dense<0.000000e+00> : vector<8x4xf32>
    %10 = tpu.matmul %8, %9, %cst_8 {dimension_numbers = #tpu.dot_dimension_numbers<[1], [0], [0], [1], [0, 0, 1, 1], [], []>} : vector<8x64xbf16>, vector<64x4xbf16>, vector<8x4xf32> -> vector<8x4xf32>
    %c0_9 = arith.constant 0 : index
    %c0_10 = arith.constant 0 : index
    %11 = vector.load %arg4[%c0_9, %c0_10] : memref<1x4xf32, #tpu.memory_space<vmem>>, vector<1x4xf32>
    %12 = vector.broadcast %11 : vector<1x4xf32> to vector<8x4xf32>
    %13 = arith.addf %10, %12 : vector<8x4xf32>
    %c0_11 = arith.constant 0 : index
    %c0_12 = arith.constant 0 : index
    %14 = vector.load %arg5[%c0_11, %c0_12] : memref<8x4xf32, #tpu.memory_space<vmem>>, vector<8x4xf32>
    tpu.vector_store %arg5[%c0_11, %c0_12], %13 {strides = array<i32>} : memref<8x4xf32, #tpu.memory_space<vmem>>, vector<8x4xf32>,
    return
  }
}

</mosaic_0001>

<bundles_post_ra>
// kernel: dqn_forward.1
= control target key start
LH: loop header
LB: loop body
LE: loop exit
PB: predicated region body
PF: predicated region fallthrough
CT: control target
= control target key end

     0   :  { %v213_v0 = vmov 0.0   ;;  %vm214_vm0 = vmmov 0   ;;  %vm37_vm1 = vcmask 130048   ;;  %vm122_vm2 = vcmask 523264   ;;  %s272_s1 = inlined_call_operand.vmem [shape: bf16[16,64], index: 1, kind: input, shape index: {}]   ;;  %s273_s0 = inlined_call_operand.vmem [shape: bf16[8,16], index: 0, kind: input, shape index: {}]   ;;  %s274_s3 = inlined_call_operand.vmem [shape: bf16[64,4], index: 3, kind: input, shape index: {}]   ;;  %s275_s2 = inlined_call_operand.vmem [shape: f32[1,64], index: 2, kind: input, shape index: {}]   ;;  %s276_s4 = inlined_call_operand.vmem [shape: f32[1,4], index: 4, kind: input, shape index: {}]   ;;  %s277_s5 = inlined_call_operand.vmem [shape: f32[8,4], index: 5, kind: output, shape index: {}]  }
   0x1   :  { %188 = vmatprep.subr.bf16.mxu0 %v213_v0  ;;  %v208_v1 = vld [vmem:[%s272_s1] sm:$0xff]   ;;  %190 = vmatprep.mubr.msk.bf16.mxu0 %vm214_vm0, %v213_v0  ;;  %v210_v4 = vld [vmem:[%s274_s3 + $0x8] sm:$0xff]   ;;  %v211_v5 = vld [vmem:[%s274_s3 + $0x10] sm:$0xff]   ;;  %vm166_vm3 = vcmask 31744  }
   0x2   :  { %v21_v2 = vld [vmem:[%s273_s0] sm:$0xf]  ;;  %194 = vmatprep.subr.bf16.mxu1 %v213_v0  ;;  %202 = vmatprep.mubr.msk.bf16.mxu1 %vm214_vm0, %v213_v0  ;;  %v212_v6 = vld [vmem:[%s274_s3 + $0x18] sm:$0xff]  }
   0x3   :  { %189 = vmatpush3.bf16.msra.mxu0 %v208_v1  ;;  %v209_v3 = vld [vmem:[%s274_s3] sm:$0xff]  }
   0x4   :  { %195 = vmatpush3.bf16.msra.mxu1 %v209_v3  ;;  %v172_v7 = vld [vmem:[%s275_s2] ss:$0 sm:$0xff] }
   0x5   :  { %196 = vmatprep.subr.bf16.mxu1 %v213_v0  ;;  %v175_v15 = vld [vmem:[%s276_s4] ss:$0 sm:$0xff] }
   0x6   :  { %191 = vmatmul.mubr.msk.bf16.vlgmr.msra.gmra.mrb[0].mxu0 %vm37_vm1, %v21_v2 }
   0x8   :  { %197 = vmatpush3.bf16.msra.mxu1 %v210_v4 }
   0x9   :  { %198 = vmatprep.subr.bf16.mxu1 %v213_v0 }
   0xc   :  { %199 = vmatpush3.bf16.msra.mxu1 %v211_v5 }
   0xd   :  { %200 = vmatprep.subr.bf16.mxu1 %v213_v0 }
  0x10   :  { %201 = vmatpush3.bf16.msra.mxu1 %v212_v6 }
  0xd9   :  { %v75_v8 = vpop.f32.mrb[0].mxu0 }
  0xda   :  { %v76_v9 = vadd.f32 %v172_v7, %v75_v8  ;;  %v192_v10 = vpop.f32.mrb[1].mxu0 }
  0xdb   :  { %v78_v11 = vpop.f32.mrb[2].mxu0 }
  0xdc   :  { %v81_v12 = vmax.f32 %v76_v9, 0.0  ;;  %v193_v13 = vpop.f32.mrb[3].mxu0 }
  0xde   :  { %v82_v14 = vpack.c.bf16 %v81_v12, %v81_v12 }
  0xe0   :  { %203 = vmatmul.mubr.msk.bf16.vlgmr.msra.gmra.mrb[0].mxu1 %vm122_vm2, %v82_v14 }
 0x1b3   :  { %v160_v16 = vpop.f32.mrb[0].mxu1 }
 0x1b4   :  { %v161_v17 = vadd.f32 %v175_v15, %v160_v16  ;;  %v204_v18 = vpop.f32.mrb[1].mxu1 }
 0x1b5   :  { %v163_v19 = vpop.f32.mrb[2].mxu1 }
 0x1b6   :  { %167 = vst.msk [vmem:[%s277_s5] sm:$0xff] %vm166_vm3, %v161_v17  ;;  %v205_v20 = vpop.f32.mrb[3].mxu1 }

</bundles_post_ra>
